<compile_context>
chip_gen: v6e
topology: v6e:2x2x1
jax: 0.10.0
libtpu: 0.0.40
codegen_flags: <defaults>
</compile_context>

<pallas_src>
import math
import jax
import jax.numpy as jnp
from jax.experimental import pallas as pl
from jax.experimental.pallas import tpu as pltpu

# ---- model hyperparameters (small, consistent with the module: d_model % nhead == 0) ----
D_MODEL = 64
NHEAD = 4
HEAD_DIM = D_MODEL // NHEAD
DIM_FF = 128
SEQ_LEN = 8
BATCH = 2
LN_EPS = 1e-5
NEG_INF = -1e9

# weight-slab column layout: [ wq | wk | wv | wo | w1 ]
_E = D_MODEL
_WQK_LO, _WQK_HI = 0, 2 * _E
_WV_LO, _WV_HI = 2 * _E, 3 * _E
_WO_LO, _WO_HI = 3 * _E, 4 * _E
_W1_LO, _W1_HI = 4 * _E, 4 * _E + DIM_FF


def _decoder_layer_kernel(x_ref, pe_ref, mask_ref, wslab_ref, w2_ref, bslab_ref,
                          out_ref, attn_ref):
    # x_ref/pe_ref: (N*L, E) batch-major rows; mask_ref: (N*L, N*L) additive
    # wslab_ref: (E, 4E + DIM_FF); w2_ref: (DIM_FF, E); bslab_ref: (8, max(DIM_FF, 2E))
    NL, E = x_ref.shape
    N, L, _ = attn_ref.shape

    x = x_ref[...]
    qk_in = x + pe_ref[...]

    # ---- fused Q|K projection (one MXU matmul) + V projection ----
    qk = jnp.dot(qk_in, wslab_ref[:, _WQK_LO:_WQK_HI],
                 preferred_element_type=jnp.float32) + bslab_ref[0:1, 0:2 * E]
    scale = 1.0 / math.sqrt(HEAD_DIM)
    q = qk[:, 0:E] * scale
    k = qk[:, E:2 * E]
    v = jnp.dot(x, wslab_ref[:, _WV_LO:_WV_HI],
                preferred_element_type=jnp.float32) + bslab_ref[1:2, 0:E]

    # ---- split heads onto a leading batch axis: (NHEAD, N*L, HEAD_DIM) ----
    def split_heads(t):
        return jnp.stack(
            [t[:, h * HEAD_DIM:(h + 1) * HEAD_DIM] for h in range(NHEAD)], axis=0)

    qh = split_heads(q)
    kh = split_heads(k)
    vh = split_heads(v)

    # ---- batched scaled dot-product attention over all heads at once ----
    # mask_ref carries both the key-padding mask and the block-diagonal batch
    # separation (cross-batch scores -> -1e9 -> exp underflows to exactly 0).
    s = jnp.einsum("hqd,hkd->hqk", qh, kh, preferred_element_type=jnp.float32)
    s = s + mask_ref[...][None, :, :]
    s = s - jnp.max(s, axis=-1, keepdims=True)
    p = jnp.exp(s)
    p = p * pl.reciprocal(jnp.sum(p, axis=-1, keepdims=True), approx=True)

    o = jnp.einsum("hqk,hkd->hqd", p, vh, preferred_element_type=jnp.float32)

    # ---- output projection, accumulated per head (no lane-axis concatenate) ----
    x2 = jnp.zeros((NL, E), jnp.float32)
    for h in range(NHEAD):
        wo_h = wslab_ref[h * HEAD_DIM:(h + 1) * HEAD_DIM, _WO_LO:_WO_HI]
        x2 = x2 + jnp.dot(o[h], wo_h, preferred_element_type=jnp.float32)
    x2 = x2 + bslab_ref[1:2, E:2 * E]

    # ---- residual + LayerNorm (norm3) ----
    y = x + x2
    mean = jnp.mean(y, axis=-1, keepdims=True)
    var = jnp.mean((y - mean) ** 2, axis=-1, keepdims=True)
    yn = (y - mean) * jax.lax.rsqrt(var + LN_EPS)
    yn = yn * bslab_ref[2:3, 0:E] + bslab_ref[2:3, E:2 * E]

    # ---- feed-forward block + residual (no norm afterwards, matches module) ----
    h1 = jnp.dot(yn, wslab_ref[:, _W1_LO:_W1_HI],
                 preferred_element_type=jnp.float32) + bslab_ref[3:4, 0:DIM_FF]
    h1 = jnp.maximum(h1, 0.0)                                               # ReLU
    ff = jnp.dot(h1, w2_ref[...], preferred_element_type=jnp.float32) + bslab_ref[4:5, 0:E]

    out_ref[...] = yn + ff

    # ---- averaged attention weights: per-batch diagonal blocks of the (NL, NL) map ----
    p_avg = jnp.mean(p, axis=0)
    for n in range(N):
        attn_ref[n] = p_avg[n * L:(n + 1) * L, n * L:(n + 1) * L]


def transformer_decoder_layer(x_lne, key_padding_mask, pos_embed_lne, params):
    """x_lne, pos_embed_lne: (L, N, E) float32. key_padding_mask: (N, L) bool (True = masked)."""
    L, N, E = x_lne.shape
    NL = N * L

    # batch-major flattening: row = n * L + l
    x_flat = jnp.transpose(x_lne, (1, 0, 2)).reshape(NL, E)
    pe_flat = jnp.transpose(pos_embed_lne, (1, 0, 2)).reshape(NL, E)

    # combined additive mask: key padding + block-diagonal batch separation
    kpm_add = jnp.where(key_padding_mask, NEG_INF, 0.0).astype(jnp.float32)   # (N, L)
    batch_ids = jnp.repeat(jnp.arange(N), L)                                  # (NL,)
    same_batch = batch_ids[:, None] == batch_ids[None, :]
    mask2d = jnp.where(same_batch, kpm_add.reshape(-1)[None, :], NEG_INF)     # (NL, NL)
    mask2d = mask2d.astype(jnp.float32)

    # ---- pack the 15 parameter tensors into 3 contiguous buffers ----
    wslab = jnp.concatenate(
        [params["wq"], params["wk"], params["wv"], params["wo"], params["w1"]],
        axis=1)                                                               # (E, 4E+FF)
    w2 = params["w2"]                                                         # (FF, E)

    bw = max(DIM_FF, 2 * E)

    def _row(*parts):
        r = jnp.concatenate(parts, axis=1)
        return jnp.pad(r, ((0, 0), (0, bw - r.shape[1])))

    bslab = jnp.concatenate([
        _row(params["bq"], params["bk"]),       # row 0: [bq | bk]
        _row(params["bv"], params["bo"]),       # row 1: [bv | bo]
        _row(params["gamma"], params["beta"]),  # row 2: [gamma | beta]
        _row(params["b1"]),                     # row 3: b1
        _row(params["b2"]),                     # row 4: [b2 | 0]
        jnp.zeros((3, bw), jnp.float32),        # pad to 8 sublanes
    ], axis=0)                                                                # (8, bw)

    full = lambda nd: (lambda i: (0,) * nd)

    in_specs = [
        pl.BlockSpec((NL, E), full(2)),          # x (flattened)
        pl.BlockSpec((NL, E), full(2)),          # position embed (flattened)
        pl.BlockSpec((NL, NL), full(2)),         # combined additive mask
        pl.BlockSpec(wslab.shape, full(2)),      # packed weights [wq|wk|wv|wo|w1]
        pl.BlockSpec(w2.shape, full(2)),         # w2
        pl.BlockSpec(bslab.shape, full(2)),      # packed biases / LN params
    ]
    out_specs = [
        pl.BlockSpec((NL, E), full(2)),          # output slab
        pl.BlockSpec((N, L, L), full(3)),        # averaged attention weights
    ]
    out_shape = [
        jax.ShapeDtypeStruct((NL, E), jnp.float32),
        jax.ShapeDtypeStruct((N, L, L), jnp.float32),
    ]

    out_flat, attn_w = pl.pallas_call(
        _decoder_layer_kernel,
        out_shape=out_shape,
        grid_spec=pltpu.PrefetchScalarGridSpec(
            num_scalar_prefetch=0,
            grid=(1,),                            # single invocation: whole problem fits in VMEM
            in_specs=in_specs,
            out_specs=out_specs,
        ),
        compiler_params=pltpu.CompilerParams(dimension_semantics=("arbitrary",)),
    )(x_flat, pe_flat, mask2d, wslab, w2, bslab)

    out_lne = out_flat.reshape(N, L, E).transpose(1, 0, 2)                    # (L, N, E)
    return out_lne, attn_w                                                    # , (N, L, L)


def _reference(x_lne, key_padding_mask, pe_lne, p):
    """Pure-JAX reference mirroring torch.nn.MultiheadAttention + the module's forward."""
    x = jnp.transpose(x_lne, (1, 0, 2))    # (N, L, E)
    pe = jnp.transpose(pe_lne, (1, 0, 2))
    qk_in = x + pe
    q = qk_in @ p["wq"] + p["bq"]
    k = qk_in @ p["wk"] + p["bk"]
    v = x @ p["wv"] + p["bv"]
    N, L, E = x.shape
    qh = q.reshape(N, L, NHEAD, HEAD_DIM).transpose(0, 2, 1, 3)
    kh = k.reshape(N, L, NHEAD, HEAD_DIM).transpose(0, 2, 1, 3)
    vh = v.reshape(N, L, NHEAD, HEAD_DIM).transpose(0, 2, 1, 3)
    s = jnp.einsum("nhqd,nhkd->nhqk", qh / math.sqrt(HEAD_DIM), kh)
    s = s + jnp.where(key_padding_mask, NEG_INF, 0.0)[:, None, None, :]
    pw = jax.nn.softmax(s, axis=-1)
    o = jnp.einsum("nhqk,nhkd->nhqd", pw, vh).transpose(0, 2, 1, 3).reshape(N, L, E)
    x2 = o @ p["wo"] + p["bo"]
    y = x + x2
    mean = y.mean(-1, keepdims=True)
    var = ((y - mean) ** 2).mean(-1, keepdims=True)
    yn = (y - mean) / jnp.sqrt(var + LN_EPS) * p["gamma"] + p["beta"]
    ff = jnp.maximum(yn @ p["w1"] + p["b1"], 0.0) @ p["w2"] + p["b2"]
    out = yn + ff
    return jnp.transpose(out, (1, 0, 2)), pw.mean(axis=1)


def _init_params(key):
    ks = jax.random.split(key, 12)
    sc = 0.05
    return {
        # projection weights stored pre-transposed so the kernel does x @ W
        "wq": sc * jax.random.normal(ks[0], (D_MODEL, D_MODEL), jnp.float32),
        "wk": sc * jax.random.normal(ks[1], (D_MODEL, D_MODEL), jnp.float32),
        "wv": sc * jax.random.normal(ks[2], (D_MODEL, D_MODEL), jnp.float32),
        "bq": sc * jax.random.normal(ks[3], (1, D_MODEL), jnp.float32),
        "bk": sc * jax.random.normal(ks[4], (1, D_MODEL), jnp.float32),
        "bv": sc * jax.random.normal(ks[5], (1, D_MODEL), jnp.float32),
        "wo": sc * jax.random.normal(ks[6], (D_MODEL, D_MODEL), jnp.float32),
        "bo": sc * jax.random.normal(ks[7], (1, D_MODEL), jnp.float32),
        "gamma": jnp.ones((1, D_MODEL), jnp.float32),
        "beta": jnp.zeros((1, D_MODEL), jnp.float32),
        "w1": sc * jax.random.normal(ks[8], (D_MODEL, DIM_FF), jnp.float32),
        "b1": sc * jax.random.normal(ks[9], (1, DIM_FF), jnp.float32),
        "w2": sc * jax.random.normal(ks[10], (DIM_FF, D_MODEL), jnp.float32),
        "b2": sc * jax.random.normal(ks[11], (1, D_MODEL), jnp.float32),
    }


if __name__ == "__main__":
    key = jax.random.PRNGKey(0)
    k_x, k_pe, k_p = jax.random.split(key, 3)

    # Inputs in PyTorch's (L, N, E) layout; key_padding_mask in (N, L) with True = masked.
    x = jax.random.normal(k_x, (SEQ_LEN, BATCH, D_MODEL), jnp.float32)
    pos_embed = jax.random.normal(k_pe, (SEQ_LEN, BATCH, D_MODEL), jnp.float32)
    key_padding_mask = jnp.zeros((BATCH, SEQ_LEN), dtype=bool)
    key_padding_mask = key_padding_mask.at[0, -2:].set(True)   # pad last 2 keys of batch 0
    key_padding_mask = key_padding_mask.at[1, -1:].set(True)   # pad last key of batch 1

    params = _init_params(k_p)

    out, attn_w = transformer_decoder_layer(x, key_padding_mask, pos_embed, params)
    out = jax.block_until_ready(out)
    attn_w = jax.block_until_ready(attn_w)

    # sanity check against a pure-JAX reference
    ref_out, ref_attn = _reference(x, key_padding_mask, pos_embed, params)
    assert out.shape == (SEQ_LEN, BATCH, D_MODEL)
    assert attn_w.shape == (BATCH, SEQ_LEN, SEQ_LEN)
    assert jnp.allclose(out, ref_out, atol=2e-3, rtol=2e-3)
    assert jnp.allclose(attn_w, ref_attn, atol=2e-3, rtol=2e-3)

    print("KERNEL_OK")
</pallas_src>

<mosaic_0001>
module attributes {stable_mosaic.version = 11 : i64} {
  func.func @_decoder_layer_kernel(%arg0: i32, %arg1: memref<16x64xf32, #tpu.memory_space<vmem>>, %arg2: memref<16x64xf32, #tpu.memory_space<vmem>>, %arg3: memref<16x16xf32, #tpu.memory_space<vmem>>, %arg4: memref<64x384xf32, #tpu.memory_space<vmem>>, %arg5: memref<128x64xf32, #tpu.memory_space<vmem>>, %arg6: memref<8x128xf32, #tpu.memory_space<vmem>>, %arg7: memref<16x64xf32, #tpu.memory_space<vmem>>, %arg8: memref<2x8x8xf32, #tpu.memory_space<vmem>>) attributes {dimension_semantics = [#tpu.dimension_semantics<arbitrary>], iteration_bounds = array<i64: 1>, scalar_prefetch = 0 : i64, scratch_operands = 0 : i64, tpu.core_type = #tpu.core_type<tc>, window_params = [{pipeline_mode = #tpu.pipeline_mode<synchronous>, transform_indices = @transform_0, window_bounds = array<i64: 16, 64>}, {pipeline_mode = #tpu.pipeline_mode<synchronous>, transform_indices = @transform_1, window_bounds = array<i64: 16, 64>}, {pipeline_mode = #tpu.pipeline_mode<synchronous>, transform_indices = @transform_2, window_bounds = array<i64: 16, 16>}, {pipeline_mode = #tpu.pipeline_mode<synchronous>, transform_indices = @transform_3, window_bounds = array<i64: 64, 384>}, {pipeline_mode = #tpu.pipeline_mode<synchronous>, transform_indices = @transform_4, window_bounds = array<i64: 128, 64>}, {pipeline_mode = #tpu.pipeline_mode<synchronous>, transform_indices = @transform_5, window_bounds = array<i64: 8, 128>}, {pipeline_mode = #tpu.pipeline_mode<synchronous>, transform_indices = @transform_6, window_bounds = array<i64: 16, 64>}, {pipeline_mode = #tpu.pipeline_mode<synchronous>, transform_indices = @transform_7, window_bounds = array<i64: 2, 8, 8>}]} {
    %c0 = arith.constant 0 : index
    %c0_0 = arith.constant 0 : index
    %0 = vector.load %arg1[%c0, %c0_0] : memref<16x64xf32, #tpu.memory_space<vmem>>, vector<16x64xf32>
    %c0_1 = arith.constant 0 : index
    %c0_2 = arith.constant 0 : index
    %1 = vector.load %arg2[%c0_1, %c0_2] : memref<16x64xf32, #tpu.memory_space<vmem>>, vector<16x64xf32>
    %2 = arith.addf %0, %1 : vector<16x64xf32>
    %c0_3 = arith.constant 0 : index
    %c0_4 = arith.constant 0 : index
    %3 = vector.load %arg4[%c0_3, %c0_4] : memref<64x384xf32, #tpu.memory_space<vmem>>, vector<64x128xf32>
    %cst = arith.constant dense<0.000000e+00> : vector<16x128xf32>
    %4 = tpu.matmul %2, %3, %cst {dimension_numbers = #tpu.dot_dimension_numbers<[1], [0], [0], [1], [0, 0, 1, 1], [], []>} : vector<16x64xf32>, vector<64x128xf32>, vector<16x128xf32> -> vector<16x128xf32>
    %c0_5 = arith.constant 0 : index
    %c0_6 = arith.constant 0 : index
    %5 = vector.load %arg6[%c0_5, %c0_6] : memref<8x128xf32, #tpu.memory_space<vmem>>, vector<1x128xf32>
    %6 = vector.broadcast %5 : vector<1x128xf32> to vector<16x128xf32>
    %7 = arith.addf %4, %6 : vector<16x128xf32>
    %8 = vector.extract_strided_slice %7 {offsets = [0, 0], sizes = [16, 64], strides = [1, 1]} : vector<16x128xf32> to vector<16x64xf32>
    %cst_7 = arith.constant 2.500000e-01 : f32
    %9 = vector.broadcast %cst_7 : f32 to vector<16x64xf32>
    %10 = arith.mulf %8, %9 : vector<16x64xf32>
    %11 = vector.extract_strided_slice %7 {offsets = [0, 64], sizes = [16, 64], strides = [1, 1]} : vector<16x128xf32> to vector<16x64xf32>
    %c0_8 = arith.constant 0 : index
    %c128 = arith.constant 128 : index
    %12 = vector.load %arg4[%c0_8, %c128] : memref<64x384xf32, #tpu.memory_space<vmem>>, vector<64x64xf32>
    %cst_9 = arith.constant dense<0.000000e+00> : vector<16x64xf32>
    %13 = tpu.matmul %0, %12, %cst_9 {dimension_numbers = #tpu.dot_dimension_numbers<[1], [0], [0], [1], [0, 0, 1, 1], [], []>} : vector<16x64xf32>, vector<64x64xf32>, vector<16x64xf32> -> vector<16x64xf32>
    %c1 = arith.constant 1 : index
    %c0_10 = arith.constant 0 : index
    %14 = vector.load %arg6[%c1, %c0_10] : memref<8x128xf32, #tpu.memory_space<vmem>>, vector<1x64xf32>
    %15 = vector.broadcast %14 : vector<1x64xf32> to vector<16x64xf32>
    %16 = arith.addf %13, %15 : vector<16x64xf32>
    %17 = vector.extract_strided_slice %10 {offsets = [0, 0], sizes = [16, 16], strides = [1, 1]} : vector<16x64xf32> to vector<16x16xf32>
    %18 = vector.extract_strided_slice %10 {offsets = [0, 16], sizes = [16, 16], strides = [1, 1]} : vector<16x64xf32> to vector<16x16xf32>
    %19 = vector.extract_strided_slice %10 {offsets = [0, 32], sizes = [16, 16], strides = [1, 1]} : vector<16x64xf32> to vector<16x16xf32>
    %20 = vector.extract_strided_slice %10 {offsets = [0, 48], sizes = [16, 16], strides = [1, 1]} : vector<16x64xf32> to vector<16x16xf32>
    %21 = vector.shape_cast %17 : vector<16x16xf32> to vector<1x16x16xf32>
    %22 = vector.shape_cast %18 : vector<16x16xf32> to vector<1x16x16xf32>
    %23 = vector.shape_cast %19 : vector<16x16xf32> to vector<1x16x16xf32>
    %24 = vector.shape_cast %20 : vector<16x16xf32> to vector<1x16x16xf32>
    %25 = tpu.concatenate %21, %22, %23, %24 in 0 : vector<1x16x16xf32>, vector<1x16x16xf32>, vector<1x16x16xf32>, vector<1x16x16xf32> -> vector<4x16x16xf32>
    %26 = vector.extract_strided_slice %11 {offsets = [0, 0], sizes = [16, 16], strides = [1, 1]} : vector<16x64xf32> to vector<16x16xf32>
    %27 = vector.extract_strided_slice %11 {offsets = [0, 16], sizes = [16, 16], strides = [1, 1]} : vector<16x64xf32> to vector<16x16xf32>
    %28 = vector.extract_strided_slice %11 {offsets = [0, 32], sizes = [16, 16], strides = [1, 1]} : vector<16x64xf32> to vector<16x16xf32>
    %29 = vector.extract_strided_slice %11 {offsets = [0, 48], sizes = [16, 16], strides = [1, 1]} : vector<16x64xf32> to vector<16x16xf32>
    %30 = vector.shape_cast %26 : vector<16x16xf32> to vector<1x16x16xf32>
    %31 = vector.shape_cast %27 : vector<16x16xf32> to vector<1x16x16xf32>
    %32 = vector.shape_cast %28 : vector<16x16xf32> to vector<1x16x16xf32>
    %33 = vector.shape_cast %29 : vector<16x16xf32> to vector<1x16x16xf32>
    %34 = tpu.concatenate %30, %31, %32, %33 in 0 : vector<1x16x16xf32>, vector<1x16x16xf32>, vector<1x16x16xf32>, vector<1x16x16xf32> -> vector<4x16x16xf32>
    %35 = vector.extract_strided_slice %16 {offsets = [0, 0], sizes = [16, 16], strides = [1, 1]} : vector<16x64xf32> to vector<16x16xf32>
    %36 = vector.extract_strided_slice %16 {offsets = [0, 16], sizes = [16, 16], strides = [1, 1]} : vector<16x64xf32> to vector<16x16xf32>
    %37 = vector.extract_strided_slice %16 {offsets = [0, 32], sizes = [16, 16], strides = [1, 1]} : vector<16x64xf32> to vector<16x16xf32>
    %38 = vector.extract_strided_slice %16 {offsets = [0, 48], sizes = [16, 16], strides = [1, 1]} : vector<16x64xf32> to vector<16x16xf32>
    %39 = vector.shape_cast %35 : vector<16x16xf32> to vector<1x16x16xf32>
    %40 = vector.shape_cast %36 : vector<16x16xf32> to vector<1x16x16xf32>
    %41 = vector.shape_cast %37 : vector<16x16xf32> to vector<1x16x16xf32>
    %42 = vector.shape_cast %38 : vector<16x16xf32> to vector<1x16x16xf32>
    %43 = tpu.concatenate %39, %40, %41, %42 in 0 : vector<1x16x16xf32>, vector<1x16x16xf32>, vector<1x16x16xf32>, vector<1x16x16xf32> -> vector<4x16x16xf32>
    "tpu.trace_start"() <{level = 10 : i32, message = "hqd,hkd->hqk"}> : () -> ()
    %cst_11 = arith.constant dense<0.000000e+00> : vector<4x16x16xf32>
    %44 = tpu.matmul %25, %34, %cst_11 {dimension_numbers = #tpu.dot_dimension_numbers<[2], [2], [1], [1], [0, 0, 0, 1, 1, 1], [0], [0]>} : vector<4x16x16xf32>, vector<4x16x16xf32>, vector<4x16x16xf32> -> vector<4x16x16xf32>
    "tpu.trace_stop"() : () -> ()
    %c0_12 = arith.constant 0 : index
    %c0_13 = arith.constant 0 : index
    %45 = vector.load %arg3[%c0_12, %c0_13] : memref<16x16xf32, #tpu.memory_space<vmem>>, vector<16x16xf32>
    %46 = vector.shape_cast %45 : vector<16x16xf32> to vector<1x16x16xf32>
    %47 = vector.broadcast %46 : vector<1x16x16xf32> to vector<4x16x16xf32>
    %48 = arith.addf %44, %47 : vector<4x16x16xf32>
    %cst_14 = arith.constant dense<0xFF800000> : vector<4x16xf32>
    %49 = vector.multi_reduction <maximumf>, %48, %cst_14 [2] : vector<4x16x16xf32> to vector<4x16xf32>
    %50 = vector.shape_cast %49 : vector<4x16xf32> to vector<4x16x1xf32>
    %51 = vector.broadcast %50 : vector<4x16x1xf32> to vector<4x16x16xf32>
    %52 = arith.subf %48, %51 : vector<4x16x16xf32>
    %53 = math.exp %52 : vector<4x16x16xf32>
    %cst_15 = arith.constant dense<0.000000e+00> : vector<4x16xf32>
    %54 = vector.multi_reduction <add>, %53, %cst_15 [2] : vector<4x16x16xf32> to vector<4x16xf32>
    %55 = vector.shape_cast %54 : vector<4x16xf32> to vector<4x16x1xf32>
    %56 = tpu.reciprocal %55 {approx = true} : vector<4x16x1xf32> -> vector<4x16x1xf32>
    %57 = vector.broadcast %56 : vector<4x16x1xf32> to vector<4x16x16xf32>
    %58 = arith.mulf %53, %57 : vector<4x16x16xf32>
    "tpu.trace_start"() <{level = 10 : i32, message = "hqk,hkd->hqd"}> : () -> ()
    %cst_16 = arith.constant dense<0.000000e+00> : vector<4x16x16xf32>
    %59 = tpu.matmul %58, %43, %cst_16 {dimension_numbers = #tpu.dot_dimension_numbers<[2], [1], [1], [2], [0, 0, 0, 1, 1, 2], [0], [0]>} : vector<4x16x16xf32>, vector<4x16x16xf32>, vector<4x16x16xf32> -> vector<4x16x16xf32>
    %cst_17 = arith.constant 0.000000e+00 : f32
    "tpu.trace_stop"() : () -> ()
    %60 = vector.broadcast %cst_17 : f32 to vector<16x64xf32>
    %c0_18 = arith.constant 0 : index
    %c192 = arith.constant 192 : index
    %61 = vector.load %arg4[%c0_18, %c192] : memref<64x384xf32, #tpu.memory_space<vmem>>, vector<16x64xf32>
    %62 = vector.extract_strided_slice %59 {offsets = [0, 0, 0], sizes = [1, 16, 16], strides = [1, 1, 1]} : vector<4x16x16xf32> to vector<1x16x16xf32>
    %63 = vector.shape_cast %62 : vector<1x16x16xf32> to vector<16x16xf32>
    %cst_19 = arith.constant dense<0.000000e+00> : vector<16x64xf32>
    %64 = tpu.matmul %63, %61, %cst_19 {dimension_numbers = #tpu.dot_dimension_numbers<[1], [0], [0], [1], [0, 0, 1, 1], [], []>} : vector<16x16xf32>, vector<16x64xf32>, vector<16x64xf32> -> vector<16x64xf32>
    %65 = arith.addf %60, %64 : vector<16x64xf32>
    %c16 = arith.constant 16 : index
    %c192_20 = arith.constant 192 : index
    %66 = vector.load %arg4[%c16, %c192_20] : memref<64x384xf32, #tpu.memory_space<vmem>>, vector<16x64xf32>
    %67 = vector.extract_strided_slice %59 {offsets = [1, 0, 0], sizes = [1, 16, 16], strides = [1, 1, 1]} : vector<4x16x16xf32> to vector<1x16x16xf32>
    %68 = vector.shape_cast %67 : vector<1x16x16xf32> to vector<16x16xf32>
    %cst_21 = arith.constant dense<0.000000e+00> : vector<16x64xf32>
    %69 = tpu.matmul %68, %66, %cst_21 {dimension_numbers = #tpu.dot_dimension_numbers<[1], [0], [0], [1], [0, 0, 1, 1], [], []>} : vector<16x16xf32>, vector<16x64xf32>, vector<16x64xf32> -> vector<16x64xf32>
    %70 = arith.addf %65, %69 : vector<16x64xf32>
    %c32 = arith.constant 32 : index
    %c192_22 = arith.constant 192 : index
    %71 = vector.load %arg4[%c32, %c192_22] : memref<64x384xf32, #tpu.memory_space<vmem>>, vector<16x64xf32>
    %72 = vector.extract_strided_slice %59 {offsets = [2, 0, 0], sizes = [1, 16, 16], strides = [1, 1, 1]} : vector<4x16x16xf32> to vector<1x16x16xf32>
    %73 = vector.shape_cast %72 : vector<1x16x16xf32> to vector<16x16xf32>
    %cst_23 = arith.constant dense<0.000000e+00> : vector<16x64xf32>
    %74 = tpu.matmul %73, %71, %cst_23 {dimension_numbers = #tpu.dot_dimension_numbers<[1], [0], [0], [1], [0, 0, 1, 1], [], []>} : vector<16x16xf32>, vector<16x64xf32>, vector<16x64xf32> -> vector<16x64xf32>
    %75 = arith.addf %70, %74 : vector<16x64xf32>
    %c48 = arith.constant 48 : index
    %c192_24 = arith.constant 192 : index
    %76 = vector.load %arg4[%c48, %c192_24] : memref<64x384xf32, #tpu.memory_space<vmem>>, vector<16x64xf32>
    %77 = vector.extract_strided_slice %59 {offsets = [3, 0, 0], sizes = [1, 16, 16], strides = [1, 1, 1]} : vector<4x16x16xf32> to vector<1x16x16xf32>
    %78 = vector.shape_cast %77 : vector<1x16x16xf32> to vector<16x16xf32>
    %cst_25 = arith.constant dense<0.000000e+00> : vector<16x64xf32>
    %79 = tpu.matmul %78, %76, %cst_25 {dimension_numbers = #tpu.dot_dimension_numbers<[1], [0], [0], [1], [0, 0, 1, 1], [], []>} : vector<16x16xf32>, vector<16x64xf32>, vector<16x64xf32> -> vector<16x64xf32>
    %80 = arith.addf %75, %79 : vector<16x64xf32>
    %c1_26 = arith.constant 1 : index
    %c64 = arith.constant 64 : index
    %81 = vector.load %arg6[%c1_26, %c64] : memref<8x128xf32, #tpu.memory_space<vmem>>, vector<1x64xf32>
    %82 = vector.broadcast %81 : vector<1x64xf32> to vector<16x64xf32>
    %83 = arith.addf %80, %82 : vector<16x64xf32>
    %84 = arith.addf %0, %83 : vector<16x64xf32>
    %cst_27 = arith.constant dense<0.000000e+00> : vector<16xf32>
    %85 = vector.multi_reduction <add>, %84, %cst_27 [1] : vector<16x64xf32> to vector<16xf32>
    %86 = vector.shape_cast %85 : vector<16xf32> to vector<16x1xf32>
    %cst_28 = arith.constant 6.400000e+01 : f32
    %87 = vector.broadcast %cst_28 : f32 to vector<16x1xf32>
    %88 = arith.divf %86, %87 : vector<16x1xf32>
    %89 = vector.broadcast %88 : vector<16x1xf32> to vector<16x64xf32>
    %90 = arith.subf %84, %89 : vector<16x64xf32>
    %91 = arith.mulf %90, %90 : vector<16x64xf32>
    %cst_29 = arith.constant dense<0.000000e+00> : vector<16xf32>
    %92 = vector.multi_reduction <add>, %91, %cst_29 [1] : vector<16x64xf32> to vector<16xf32>
    %93 = vector.shape_cast %92 : vector<16xf32> to vector<16x1xf32>
    %cst_30 = arith.constant 6.400000e+01 : f32
    %94 = vector.broadcast %cst_30 : f32 to vector<16x1xf32>
    %95 = arith.divf %93, %94 : vector<16x1xf32>
    %96 = vector.broadcast %88 : vector<16x1xf32> to vector<16x64xf32>
    %97 = arith.subf %84, %96 : vector<16x64xf32>
    %cst_31 = arith.constant 9.99999974E-6 : f32
    %98 = vector.broadcast %cst_31 : f32 to vector<16x1xf32>
    %99 = arith.addf %95, %98 : vector<16x1xf32>
    %100 = math.rsqrt %99 : vector<16x1xf32>
    %101 = vector.broadcast %100 : vector<16x1xf32> to vector<16x64xf32>
    %102 = arith.mulf %97, %101 : vector<16x64xf32>
    %c2 = arith.constant 2 : index
    %c0_32 = arith.constant 0 : index
    %103 = vector.load %arg6[%c2, %c0_32] : memref<8x128xf32, #tpu.memory_space<vmem>>, vector<1x64xf32>
    %104 = vector.broadcast %103 : vector<1x64xf32> to vector<16x64xf32>
    %105 = arith.mulf %102, %104 : vector<16x64xf32>
    %c2_33 = arith.constant 2 : index
    %c64_34 = arith.constant 64 : index
    %106 = vector.load %arg6[%c2_33, %c64_34] : memref<8x128xf32, #tpu.memory_space<vmem>>, vector<1x64xf32>
    %107 = vector.broadcast %106 : vector<1x64xf32> to vector<16x64xf32>
    %108 = arith.addf %105, %107 : vector<16x64xf32>
    %c0_35 = arith.constant 0 : index
    %c256 = arith.constant 256 : index
    %109 = vector.load %arg4[%c0_35, %c256] : memref<64x384xf32, #tpu.memory_space<vmem>>, vector<64x128xf32>
    %cst_36 = arith.constant dense<0.000000e+00> : vector<16x128xf32>
    %110 = tpu.matmul %108, %109, %cst_36 {dimension_numbers = #tpu.dot_dimension_numbers<[1], [0], [0], [1], [0, 0, 1, 1], [], []>} : vector<16x64xf32>, vector<64x128xf32>, vector<16x128xf32> -> vector<16x128xf32>
    %c3 = arith.constant 3 : index
    %c0_37 = arith.constant 0 : index
    %111 = vector.load %arg6[%c3, %c0_37] : memref<8x128xf32, #tpu.memory_space<vmem>>, vector<1x128xf32>
    %112 = vector.broadcast %111 : vector<1x128xf32> to vector<16x128xf32>
    %113 = arith.addf %110, %112 : vector<16x128xf32>
    %cst_38 = arith.constant 0.000000e+00 : f32
    %114 = vector.broadcast %cst_38 : f32 to vector<16x128xf32>
    %115 = arith.maximumf %113, %114 : vector<16x128xf32>
    %c0_39 = arith.constant 0 : index
    %c0_40 = arith.constant 0 : index
    %116 = vector.load %arg5[%c0_39, %c0_40] : memref<128x64xf32, #tpu.memory_space<vmem>>, vector<128x64xf32>
    %cst_41 = arith.constant dense<0.000000e+00> : vector<16x64xf32>
    %117 = tpu.matmul %115, %116, %cst_41 {dimension_numbers = #tpu.dot_dimension_numbers<[1], [0], [0], [1], [0, 0, 1, 1], [], []>} : vector<16x128xf32>, vector<128x64xf32>, vector<16x64xf32> -> vector<16x64xf32>
    %c4 = arith.constant 4 : index
    %c0_42 = arith.constant 0 : index
    %118 = vector.load %arg6[%c4, %c0_42] : memref<8x128xf32, #tpu.memory_space<vmem>>, vector<1x64xf32>
    %119 = vector.broadcast %118 : vector<1x64xf32> to vector<16x64xf32>
    %120 = arith.addf %117, %119 : vector<16x64xf32>
    %121 = arith.addf %108, %120 : vector<16x64xf32>
    %c0_43 = arith.constant 0 : index
    %c0_44 = arith.constant 0 : index
    %122 = vector.load %arg7[%c0_43, %c0_44] : memref<16x64xf32, #tpu.memory_space<vmem>>, vector<16x64xf32>
    tpu.vector_store %arg7[%c0_43, %c0_44], %121 {strides = array<i32>} : memref<16x64xf32, #tpu.memory_space<vmem>>, vector<16x64xf32>,
    %cst_45 = arith.constant dense<0.000000e+00> : vector<16x16xf32>
    %123 = vector.multi_reduction <add>, %58, %cst_45 [0] : vector<4x16x16xf32> to vector<16x16xf32>
    %cst_46 = arith.constant 4.000000e+00 : f32
    %124 = vector.broadcast %cst_46 : f32 to vector<16x16xf32>
    %125 = arith.divf %123, %124 : vector<16x16xf32>
    %126 = vector.extract_strided_slice %125 {offsets = [0, 0], sizes = [8, 8], strides = [1, 1]} : vector<16x16xf32> to vector<8x8xf32>
    %c0_47 = arith.constant 0 : index
    %c0_48 = arith.constant 0 : index
    %c0_49 = arith.constant 0 : index
    %127 = vector.load %arg8[%c0_47, %c0_48, %c0_49] : memref<2x8x8xf32, #tpu.memory_space<vmem>>, vector<1x8x8xf32>
    %128 = vector.shape_cast %127 : vector<1x8x8xf32> to vector<8x8xf32>
    %129 = vector.shape_cast %126 : vector<8x8xf32> to vector<1x8x8xf32>
    tpu.vector_store %arg8[%c0_47, %c0_48, %c0_49], %129 {strides = array<i32>} : memref<2x8x8xf32, #tpu.memory_space<vmem>>, vector<1x8x8xf32>,
    %130 = vector.extract_strided_slice %125 {offsets = [8, 8], sizes = [8, 8], strides = [1, 1]} : vector<16x16xf32> to vector<8x8xf32>
    %c1_50 = arith.constant 1 : index
    %c0_51 = arith.constant 0 : index
    %c0_52 = arith.constant 0 : index
    %131 = vector.load %arg8[%c1_50, %c0_51, %c0_52] : memref<2x8x8xf32, #tpu.memory_space<vmem>>, vector<1x8x8xf32>
    %132 = vector.shape_cast %131 : vector<1x8x8xf32> to vector<8x8xf32>
    %133 = vector.shape_cast %130 : vector<8x8xf32> to vector<1x8x8xf32>
    tpu.vector_store %arg8[%c1_50, %c0_51, %c0_52], %133 {strides = array<i32>} : memref<2x8x8xf32, #tpu.memory_space<vmem>>, vector<1x8x8xf32>,
    return
  }
  func.func @transform_0(%arg0: i32) -> (i32, i32) {
    %c0_i32 = arith.constant 0 : i32
    %c0_i32_0 = arith.constant 0 : i32
    %c0_i32_1 = arith.constant 0 : i32
    return %c0_i32, %c0_i32_0 : i32, i32
  }
  func.func @transform_1(%arg0: i32) -> (i32, i32) {
    %c0_i32 = arith.constant 0 : i32
    %c0_i32_0 = arith.constant 0 : i32
    %c0_i32_1 = arith.constant 0 : i32
    return %c0_i32, %c0_i32_0 : i32, i32
  }
  func.func @transform_2(%arg0: i32) -> (i32, i32) {
    %c0_i32 = arith.constant 0 : i32
    %c0_i32_0 = arith.constant 0 : i32
    %c0_i32_1 = arith.constant 0 : i32
    return %c0_i32, %c0_i32_0 : i32, i32
  }
  func.func @transform_3(%arg0: i32) -> (i32, i32) {
    %c0_i32 = arith.constant 0 : i32
    %c0_i32_0 = arith.constant 0 : i32
    %c0_i32_1 = arith.constant 0 : i32
    return %c0_i32, %c0_i32_0 : i32, i32
  }
  func.func @transform_4(%arg0: i32) -> (i32, i32) {
    %c0_i32 = arith.constant 0 : i32
    %c0_i32_0 = arith.constant 0 : i32
    %c0_i32_1 = arith.constant 0 : i32
    return %c0_i32, %c0_i32_0 : i32, i32
  }
  func.func @transform_5(%arg0: i32) -> (i32, i32) {
    %c0_i32 = arith.constant 0 : i32
    %c0_i32_0 = arith.constant 0 : i32
    %c0_i32_1 = arith.constant 0 : i32
    return %c0_i32, %c0_i32_0 : i32, i32
  }
  func.func @transform_6(%arg0: i32) -> (i32, i32) {
    %c0_i32 = arith.constant 0 : i32
    %c0_i32_0 = arith.constant 0 : i32
    %c0_i32_1 = arith.constant 0 : i32
    return %c0_i32, %c0_i32_0 : i32, i32
  }
  func.func @transform_7(%arg0: i32) -> (i32, i32, i32) {
    %c0_i32 = arith.constant 0 : i32
    %c0_i32_0 = arith.constant 0 : i32
    %c0_i32_1 = arith.constant 0 : i32
    %c0_i32_2 = arith.constant 0 : i32
    return %c0_i32, %c0_i32_0, %c0_i32_1 : i32, i32, i32
  }
}

</mosaic_0001>

<bundles_post_ra>
// kernel: tpu_custom_call.1
= control target key start
LH: loop header
LB: loop body
LE: loop exit
PB: predicated region body
PF: predicated region fallthrough
CT: control target
= control target key end

     0   :  { %13 = vsyncpa [#allocation3], 0  ;;  %s2699_s0 = inlined_call_operand.hbm [shape: f32[16,64], index: 0, kind: input, shape index: {}]   ;;  %s2700_s1 = inlined_call_operand.hbm [shape: f32[16,64], index: 1, kind: input, shape index: {}]   ;;  %s2701_s2 = inlined_call_operand.hbm [shape: f32[16,16], index: 2, kind: input, shape index: {}]   ;;  %s2702_s3 = inlined_call_operand.vmem [shape: f32[64,384], index: 3, kind: input, shape index: {}]   ;;  %s2703_s4 = inlined_call_operand.vmem [shape: f32[128,64], index: 4, kind: input, shape index: {}]   ;;  %s2704_s5 = inlined_call_operand.hbm [shape: f32[8,128], index: 5, kind: input, shape index: {}]   ;;  %s2705_s6 = inlined_call_operand.hbm [shape: f32[16,64], index: 6, kind: output, shape index: {0}]   ;;  %s2706_s7 = inlined_call_operand.hbm [shape: f32[2,8,8], index: 7, kind: output, shape index: {1}]  }
   0x1   :  { %14 = vsyncpa [#allocation6], 0 }
   0x2   :  { %15 = vsyncpa [#allocation9], 0 }
   0x3   :  { %16 = vsyncpa [#allocation4], 0 }
   0x4   :  { %17 = vsyncpa [#allocation12], 0  ;;  %s2260_s24 = smov [#allocation5]   ;;  %s2261_s26 = smov [#allocation2]  }
   0x5   :  { %s35_s25 = sshll.u32 %s2260_s24, 4  ;;  %s23_s27 = sshll.u32 %s2261_s26, 4  ;;  %s36_s25 = int_to_ptr.vmem [resolvable:$true] %s35_s25  ;;  %s24_s27 = int_to_ptr.vmem [resolvable:$true] %s23_s27 }
   0x6   :  { %s2138_s28 = scalar_lea.vmem %s36_s25, 256  ;;  %p2143_p1 = scmp.lt.s32.totalorder %s36_s25, %s36_s25 }
   0x7   :  { %p2139_p0 = scmp.ne.s32.totalorder %s36_s25, %s2138_s28  ;;  %p2144_p2 = scmp.lt.s32.totalorder %s2138_s28, %s2138_s28 }
   0x9   :  { %p2145_p3 = por %p2144_p2, %p2143_p1 }
   0xb   :  { %p2146_p4 = pnand %p2145_p3, %p2139_p0 }
   0xd   :  { %2149 = shalt.err (!%p2146_p4)
}
   0xe   :  { %s2262_s29 = smov 128   ;;  %s2263_s30 = smov 8  }
   0xf   :  { %41 = dma.hbm_to_vmem [thread:$0]  %s2700_s1, 256, %s36_s25, [#allocation6], %s2262_s29, %s2262_s29, %s2263_s30  }
  0x10   :  { %s2158_s10 = scalar_lea.vmem %s24_s27, 256  ;;  %p2163_p6 = scmp.lt.s32.totalorder %s24_s27, %s24_s27 }
  0x11   :  { %p2159_p5 = scmp.ne.s32.totalorder %s24_s27, %s2158_s10  ;;  %p2164_p7 = scmp.lt.s32.totalorder %s2158_s10, %s2158_s10 }
  0x13   :  { %p2165_p8 = por %p2164_p7, %p2163_p6 }
  0x15   :  { %p2166_p9 = pnand %p2165_p8, %p2159_p5 }
  0x17   :  { %2169 = shalt.err (!%p2166_p9)
}
  0x18   :  { %29 = dma.hbm_to_vmem [thread:$0]  %s2699_s0, 256, %s24_s27, [#allocation3], %s2262_s29, %s2262_s29, %s2263_s30  }
  0x19   :  { %s2264_s13 = smov [#allocation7]   ;;  %s2265_s15 = smov [#allocation8]  }
  0x1a   :  { %s47_s14 = sshll.u32 %s2264_s13, 4  ;;  %s64_s16 = sshll.u32 %s2265_s15, 4  ;;  %s48_s14 = int_to_ptr.vmem [resolvable:$true] %s47_s14  ;;  %s65_s16 = int_to_ptr.vmem [resolvable:$true] %s64_s16 }
  0x1b   :  { %s2178_s1 = scalar_lea.vmem %s48_s14, 256  ;;  %p2183_p11 = scmp.lt.s32.totalorder %s48_s14, %s48_s14 }
  0x1c   :  { %p2179_p10 = scmp.ne.s32.totalorder %s48_s14, %s2178_s1  ;;  %p2184_p12 = scmp.lt.s32.totalorder %s2178_s1, %s2178_s1 }
  0x1e   :  { %p2185_p13 = por %p2184_p12, %p2183_p11 }
  0x20   :  { %p2186_p0 = pnand %p2185_p13, %p2179_p10 }
  0x22   :  { %2189 = shalt.err (!%p2186_p0)
}
  0x23   :  { %53 = dma.hbm_to_vmem [thread:$0]  %s2701_s2, 256, %s48_s14, [#allocation6], %s2262_s29, %s2262_s29, %s2263_s30  }
  0x24   :  { %s2198_s0 = scalar_lea.vmem %s65_s16, 128  ;;  %p2203_p2 = scmp.lt.s32.totalorder %s65_s16, %s65_s16 }
  0x25   :  { %p2199_p1 = scmp.ne.s32.totalorder %s65_s16, %s2198_s0  ;;  %p2204_p3 = scmp.lt.s32.totalorder %s2198_s0, %s2198_s0 }
  0x27   :  { %p2205_p4 = por %p2204_p3, %p2203_p2 }
  0x29   :  { %p2206_p5 = pnand %p2205_p4, %p2199_p1 }
  0x2b   :  { %2209 = shalt.err (!%p2206_p5)
}
  0x2c   :  { %67 = dma.hbm_to_vmem [thread:$0]  %s2704_s5, 128, %s65_s16, [#allocation9]  }
  0x2d   :  { %2250 = dma.done.wait [#allocation3], 256  }
  0x2e   :  { %2251 = vsyncadd [#allocation3], 4294967040 }
  0x2f   :  { %2252 = dma.done.wait [#allocation6], 512  }
  0x30   :  { %2253 = vsyncadd [#allocation6], 4294966784 }
  0x31   :  { %2254 = dma.done.wait [#allocation9], 128  }
  0x32   :  { %2255 = vsyncadd [#allocation9], 4294967168  ;;  %v93_v0 = vld [vmem:[%s2702_s3 + $0xa8] sm:$0xff]  ;;  %v92_v1 = vld [vmem:[%s2702_s3 + $0x90] sm:$0xff]  ;;  %vm99_vm0 = vcmask 523264   ;;  %s2266_s14 = smov 96  }
  0x33   :  { %1905 = vmatprep.subr.mxu0 %v93_v0  ;;  %v91_v2 = vld [vmem:[%s2702_s3 + $0x78] sm:$0xff]  ;;  %v2343_v3 = vld [vmem:[#allocation2] sm:$0xff]  ;;  %v82_v4 = vld [vmem:[#allocation5] sm:$0xff]  ;;  %s2267_s15 = smov 112   ;;  %vm331_vm1 = vcmask 130048   ;;  %s2268_s16 = smov 80  }
  0x34   :  { %1906 = vmatpush3.msra.mxu0 %v93_v0  ;;  %1940 = vmatprep.mubr.msk.f32.mxu1 %vm99_vm0, %v2343_v3  ;;  %v90_v5 = vld [vmem:[%s2702_s3 + $0x60] sm:$0xff]  ;;  %v84_v6 = vadd.f32 %v82_v4, %v2343_v3  ;;  %v89_v7 = vld [vmem:[%s2702_s3 + $0x48] sm:$0xff]  ;;  %v88_v8 = vld [vmem:[%s2702_s3 + $0x30] sm:$0xff]  ;;  %s2269_s21 = smov 64   ;;  %vm1722_vm2 = vcmask 64512   ;;  %s2270_s13 = smov 120  }
  0x35   :  { %1907 = vmatprep.subr.mxu0 %v92_v1  ;;  %v87_v9 = vld [vmem:[%s2702_s3 + $0x18] sm:$0xff]  ;;  %v2361_v10 = vld [vmem:[#allocation2 + $0x8] sm:$0xff]  ;;  %v86_v12 = vld [vmem:[%s2702_s3] sm:$0xff] }
  0x36   :  { %1908 = vmatpush3.msra.mxu0 %v92_v1  ;;  %1921 = vmatprep.mubr.msk.f32.mxu0 %vm99_vm0, %v84_v6  ;;  %v83_v11 = vld [vmem:[#allocation5 + $0x8] sm:$0xff]  ;;  %v1765_v14 = vld [vmem:[#allocation8] ss:$0 sm:$0xff]  ;;  %v2391_v22 = vld [vmem:[%s2702_s3 + $0x80] sm:$0xff] }
  0x37   :  { %1909 = vmatprep.subr.mxu0 %v91_v2  ;;  %v85_v13 = vadd.f32 %v83_v11, %v2361_v10  ;;  %v2378_v20 = vld [vmem:[%s2702_s3 + $0xb0] sm:$0xff]  ;;  %v2383_v21 = vld [vmem:[%s2702_s3 + $0x98] sm:$0xff]  ;;  %v2399_v23 = vld [vmem:[%s2702_s3 + $0x68] sm:$0xff] }
  0x38   :  { %1910 = vmatpush3.msra.mxu0 %v91_v2  ;;  %1924 = vmatprep.subr.mxu1 %v2378_v20  ;;  %v2408_v24 = vld [vmem:[%s2702_s3 + $0x50] sm:$0xff]  ;;  %v2415_v25 = vld [vmem:[%s2702_s3 + $0x38] sm:$0xff]  ;;  %v2422_v26 = vld [vmem:[%s2702_s3 + $0x20] sm:$0xff] }
  0x39   :  { %1911 = vmatprep.subr.mxu0 %v90_v5  ;;  %1925 = vmatpush3.msra.mxu1 %v2378_v20  ;;  %v2429_v27 = vld [vmem:[%s2702_s3 + $0x8] sm:$0xff]  ;;  %v2470_v50 = vld [vmem:[#allocation8 + $0x1] ss:$0 sm:$0xff]  ;;  %v325_v56 = vld [vmem:[#allocation7] sm:$0xff] }
  0x3a   :  { %1912 = vmatpush3.msra.mxu0 %v90_v5  ;;  %1926 = vmatprep.subr.mxu1 %v2383_v21  ;;  %v326_v54 = vld [vmem:[#allocation7 + $0x8] sm:$0xff] }
  0x3b   :  { %1913 = vmatprep.subr.mxu0 %v89_v7  ;;  %1927 = vmatpush3.msra.mxu1 %v2383_v21 }
  0x3c   :  { %1914 = vmatpush3.msra.mxu0 %v89_v7  ;;  %1928 = vmatprep.subr.mxu1 %v2391_v22 }
  0x3d   :  { %1915 = vmatprep.subr.mxu0 %v88_v8  ;;  %1929 = vmatpush3.msra.mxu1 %v2391_v22 }
  0x3e   :  { %1916 = vmatpush3.msra.mxu0 %v88_v8  ;;  %1930 = vmatprep.subr.mxu1 %v2399_v23 }
  0x3f   :  { %1917 = vmatprep.subr.mxu0 %v87_v9  ;;  %1931 = vmatpush3.msra.mxu1 %v2399_v23 }
  0x40   :  { %1918 = vmatpush3.msra.mxu0 %v87_v9  ;;  %1932 = vmatprep.subr.mxu1 %v2408_v24 }
  0x41   :  { %1919 = vmatprep.subr.mxu0 %v86_v12  ;;  %1933 = vmatpush3.msra.mxu1 %v2408_v24 }
  0x42   :  { %1920 = vmatpush3.msra.mxu0 %v86_v12  ;;  %1934 = vmatprep.subr.mxu1 %v2415_v25 }
  0x43   :  { %1922 = vmatmul.mubr.msk.f32.vlgmr.msra.gmra.mxu0 %vm99_vm0, %v85_v13  ;;  %1935 = vmatpush3.msra.mxu1 %v2415_v25 }
  0x44   :  { %1936 = vmatprep.subr.mxu1 %v2422_v26 }
  0x45   :  { %1937 = vmatpush3.msra.mxu1 %v2422_v26 }
  0x46   :  { %1938 = vmatprep.subr.mxu1 %v2429_v27 }
  0x47   :  { %1939 = vmatpush3.msra.mxu1 %v2429_v27 }
  0x48   :  { %1941 = vmatmul.mubr.msk.f32.vlgmr.msra.gmra.mxu1 %vm99_vm0, %v2361_v10 }
 0x103   :  { %v1923_v15 = vpop.f32.mrf.mxu0 }
 0x104   :  { %v178_v16 = vadd.f32 %v1923_v15, %v1765_v14 }
 0x105   :  { %v172_v17 = vpop.f32.mrf.mxu0 }
 0x106   :  { %v173_v18 = vadd.f32 %v1765_v14, %v172_v17  ;;  %299 = vrot.lane.b32.xlu1 %v178_v16, %s2266_s14  ;;  %295 = vrot.lane.b32.xlu0 %v178_v16, %s2267_s15  ;;  %v182_v32 = vmul.f32 0.25, %v178_v16 }
 0x108   :  { %v181_v19 = vmul.f32 0.25, %v173_v18  ;;  %v1942_v49 = vpop.f32.mrf.mxu1 }
 0x109   :  { %v2473_v51 = vadd.f32 %v1942_v49, %v2470_v50 }
 0x10a   :  { %303 = vrot.lane.b32.xlu1 %v178_v16, %s2268_s16  ;;  %293 = vrot.lane.b32.xlu0 %v173_v18, %s2267_s15  ;;  %v268_v52 = vpop.f32.mrf.mxu1 }
 0x10b   :  { %1947 = vmatprep.mubr.msk.f32.mxu0 %vm331_vm1, %v181_v19  ;;  %v2476_v53 = vadd.f32 %v2470_v50, %v268_v52 }
 0x10e   :  { %301 = vrot.lane.b32.xlu1 %v173_v18, %s2268_s16  ;;  %297 = vrot.lane.b32.xlu0 %v173_v18, %s2266_s14 }
 0x112   :  { %327 = vrot.lane.b32.xlu1 %v173_v18, %s2269_s21  ;;  %329 = vrot.lane.b32.xlu0 %v178_v16, %s2269_s21 }
 0x178   :  { %v300_v28 = vpop.permute.xlu1 %299  ;;  %v296_v29 = vpop.permute.xlu0 %295 }
 0x179   :  { %504 = vrot.lane.b32.xlu1 %v300_v28, %s2269_s21  ;;  %417 = vrot.lane.b32.xlu0 %v296_v29, %s2269_s21 }
 0x17c   :  { %v304_v30 = vpop.permute.xlu1 %303  ;;  %v294_v31 = vpop.permute.xlu0 %293 }
 0x17d   :  { %415 = vrot.lane.b32.xlu1 %v294_v31, %s2269_s21  ;;  %279 = vrot.lane.b32.xlu0 %v181_v19, %s2267_s15 }
 0x180   :  { %v302_v33 = vpop.permute.xlu1 %301  ;;  %v298_v34 = vpop.permute.xlu0 %297 }
 0x181   :  { %591 = vrot.lane.b32.xlu1 %v304_v30, %s2269_s21  ;;  %281 = vrot.lane.b32.xlu0 %v182_v32, %s2267_s15 }
 0x184   :  { %v330_v35 = vpop.permute.xlu0 %329  ;;  %v328_v36 = vpop.permute.xlu1 %327 }
 0x185   :  { %285 = vrot.lane.b32.xlu1 %v182_v32, %s2266_s14  ;;  %1943 = vmatprep.subr.msk.mxu0 %vm331_vm1, %v330_v35 }
 0x186   :  { %502 = vrot.lane.b32.xlu0 %v298_v34, %s2269_s21  ;;  %1944 = vmatpush3.xpose.msk.msra.mxu0 %vm331_vm1, %v330_v35 }
 0x187   :  { %1945 = vmatprep.subr.msk.mxu0 %vm331_vm1, %v328_v36 }
 0x189   :  { %589 = vrot.lane.b32.xlu1 %v302_v33, %s2269_s21 }
 0x18a   :  { %283 = vrot.lane.b32.xlu0 %v181_v19, %s2266_s14  ;;  %1946 = vmatpush3.xpose.msk.msra.mxu0 %vm331_vm1, %v328_v36 }
 0x18d   :  { %289 = vrot.lane.b32.xlu1 %v182_v32, %s2268_s16  ;;  %1948 = vmatmul.mubr.msk.f32.vlgmr.msra.gmra.mxu0 %vm331_vm1, %v182_v32 }
 0x18e   :  { %287 = vrot.lane.b32.xlu0 %v181_v19, %s2268_s16 }
 0x1eb   :  { %v505_v37 = vpop.permute.xlu1 %504  ;;  %v418_v38 = vpop.permute.xlu0 %417 }
 0x1ec   :  { %1950 = vmatprep.subr.msk.mxu0 %vm331_vm1, %v418_v38 }
 0x1ed   :  { %1951 = vmatpush3.xpose.msk.msra.mxu0 %vm331_vm1, %v418_v38 }
 0x1ef   :  { %v416_v39 = vpop.permute.xlu1 %415  ;;  %v280_v40 = vpop.permute.xlu0 %279 }
 0x1f0   :  { %1952 = vmatprep.subr.msk.mxu0 %vm331_vm1, %v416_v39  ;;  %1954 = vmatprep.mubr.msk.f32.mxu0 %vm331_vm1, %v280_v40 }
 0x1f1   :  { %1953 = vmatpush3.xpose.msk.msra.mxu0 %vm331_vm1, %v416_v39 }
 0x1f2   :  { %1957 = vmatprep.subr.msk.mxu0 %vm331_vm1, %v505_v37 }
 0x1f3   :  { %v592_v41 = vpop.permute.xlu1 %591  ;;  %v282_v42 = vpop.permute.xlu0 %281 }
 0x1f4   :  { %1955 = vmatmul.mubr.msk.f32.vlgmr.msra.gmra.mxu0 %vm331_vm1, %v282_v42  ;;  %1964 = vmatprep.subr.msk.mxu1 %vm331_vm1, %v592_v41 }
 0x1f5   :  { %1958 = vmatpush3.xpose.msk.msra.mxu0 %vm331_vm1, %v505_v37  ;;  %1965 = vmatpush3.xpose.msk.msra.mxu1 %vm331_vm1, %v592_v41 }
 0x1f7   :  { %v286_v43 = vpop.permute.xlu1 %285 }
 0x1f8   :  { %v503_v44 = vpop.permute.xlu0 %502 }
 0x1f9   :  { %1959 = vmatprep.subr.msk.mxu0 %vm331_vm1, %v503_v44 }
 0x1fa   :  { %1960 = vmatpush3.xpose.msk.msra.mxu0 %vm331_vm1, %v503_v44 }
 0x1fb   :  { %v590_v45 = vpop.permute.xlu1 %589  ;;  %1971 = vmatprep.subr.mxu0 %v2473_v51 }
 0x1fc   :  { %v284_v46 = vpop.permute.xlu0 %283  ;;  %1966 = vmatprep.subr.msk.mxu1 %vm331_vm1, %v590_v45 }
 0x1fd   :  { %1961 = vmatprep.mubr.msk.f32.mxu0 %vm331_vm1, %v284_v46  ;;  %1967 = vmatpush3.xpose.msk.msra.mxu1 %vm331_vm1, %v590_v45 }
 0x1fe   :  { %1962 = vmatmul.mubr.msk.f32.vlgmr.msra.gmra.mxu0 %vm331_vm1, %v286_v43 }
 0x1ff   :  { %v290_v47 = vpop.permute.xlu1 %289  ;;  %1972 = vmatpush3.msra.mxu0 %v2473_v51 }
 0x200   :  { %v288_v48 = vpop.permute.xlu0 %287  ;;  %1973 = vmatprep.subr.mxu0 %v2476_v53 }
 0x201   :  { %1968 = vmatprep.mubr.msk.f32.mxu1 %vm331_vm1, %v288_v48  ;;  %1974 = vmatpush3.msra.mxu0 %v2476_v53 }
 0x202   :  { %1969 = vmatmul.mubr.msk.f32.vlgmr.msra.gmra.mxu1 %vm331_vm1, %v290_v47 }
 0x24d   :  { %v1949_v55 = vpop.f32.mrf.mxu0 }
 0x24e   :  { %v412_v57 = vadd.f32 %v1949_v55, %v326_v54 }
 0x24f   :  { %v406_v58 = vpop.f32.mrf.mxu0 }
 0x250   :  { %v407_v59 = vadd.f32 %v406_v58, %v325_v56  ;;  %v679_v60 = vsel %vm331_vm1, %v412_v57, -inf }
 0x251   :  { %680 = vmax.xlane.f32.xlu0 %v679_v60 }
 0x252   :  { %v676_v61 = vsel %vm331_vm1, %v407_v59, -inf }
 0x255   :  { %677 = vmax.xlane.f32.xlu0 %v676_v61 }
 0x2b4   :  { %v1956_v62 = vpop.f32.mrf.mxu0 }
 0x2b5   :  { %v499_v63 = vadd.f32 %v1956_v62, %v326_v54 }
 0x2b6   :  { %v493_v0 = vpop.f32.mrf.mxu0 }
 0x2b7   :  { %v494_v1 = vadd.f32 %v493_v0, %v325_v56  ;;  %v685_v2 = vsel %vm331_vm1, %v499_v63, -inf }
 0x2b8   :  { %686 = vmax.xlane.f32.xlu0 %v685_v2 }
 0x2b9   :  { %v682_v4 = vsel %vm331_vm1, %v494_v1, -inf }
 0x2ba   :  { %683 = vmax.xlane.f32.xlu1 %v682_v4 }
 0x2be   :  { %v1963_v5 = vpop.f32.mrf.mxu0 }
 0x2bf   :  { %v586_v6 = vadd.f32 %v1963_v5, %v326_v54 }
 0x2c0   :  { %v580_v7 = vpop.f32.mrf.mxu0 }
 0x2c1   :  { %v581_v8 = vadd.f32 %v580_v7, %v325_v56  ;;  %v691_v9 = vsel %vm331_vm1, %v586_v6, -inf }
 0x2c2   :  { %v1970_v11 = vpop.f32.mrf.mxu1  ;;  %692 = vmax.xlane.f32.xlu0 %v691_v9 }
 0x2c3   :  { %v673_v12 = vadd.f32 %v1970_v11, %v326_v54  ;;  %v688_v13 = vsel %vm331_vm1, %v581_v8, -inf }
 0x2c4   :  { %v667_v14 = vpop.f32.mrf.mxu1  ;;  %689 = vmax.xlane.f32.xlu1 %v688_v13 }
 0x2c5   :  { %v668_v15 = vadd.f32 %v667_v14, %v325_v56  ;;  %v697_v16 = vsel %vm331_vm1, %v673_v12, -inf }
 0x2c6   :  { %698 = vmax.xlane.f32.xlu0 %v697_v16 }
 0x2c7   :  { %v694_v17 = vsel %vm331_vm1, %v668_v15, -inf }
 0x2c8   :  { %695 = vmax.xlane.f32.xlu1 %v694_v17 }
 0x2d9   :  { %309 = vrot.lane.b32.xlu1 %v2473_v51, %s2267_s15 }
 0x2da   :  { %v681_v18 = vpop.xlane.xlu0 %680 }
 0x2db   :  { %v701_v19 = vsub.f32 %v412_v57, %v681_v18 }
 0x2dc   :  { %307 = vrot.lane.b32.xlu0 %v2476_v53, %s2267_s15 }
 0x2dd   :  { %315 = vrot.lane.b32.xlu1 %v2473_v51, %s2266_s14  ;;  %v710_v29 = vmul.f32 1.442695, %v701_v19 }
 0x2de   :  { %v678_v28 = vpop.xlane.xlu0 %677 }
 0x2df   :  { %v700_v30 = vsub.f32 %v407_v59, %v678_v28  ;;  %2094 = vpow2.f32 %v710_v29 }
 0x2e1   :  { %313 = vrot.lane.b32.xlu1 %v2476_v53, %s2266_s14  ;;  %v708_v31 = vmul.f32 1.442695, %v700_v30 }
 0x2e3   :  { %2096 = vpow2.f32 %v708_v31 }
 0x2ec   :  { %v2498_v32 = vpop.eup %2094 }
 0x2ed   :  { %v727_v33 = vsel %vm331_vm1, %v2498_v32, 0.0 }
 0x2f0   :  { %v2502_v34 = vpop.eup %2096 }
 0x2f1   :  { %v724_v35 = vsel %vm331_vm1, %v2502_v34, 0.0 }
 0x305   :  { %728 = vadd.xlane.f32.xlu1 %v727_v33 }
 0x309   :  { %725 = vadd.xlane.f32.xlu1 %v724_v35 }
 0x341   :  { %v687_v36 = vpop.xlane.xlu0 %686 }
 0x342   :  { %v703_v37 = vsub.f32 %v499_v63, %v687_v36 }
 0x343   :  { %v684_v39 = vpop.xlane.xlu1 %683 }
 0x344   :  { %v714_v38 = vmul.f32 1.442695, %v703_v37  ;;  %v702_v41 = vsub.f32 %v494_v1, %v684_v39 }
 0x346   :  { %2098 = vpow2.f32 %v714_v38  ;;  %v712_v46 = vmul.f32 1.442695, %v702_v41 }
 0x34b   :  { %v693_v40 = vpop.xlane.xlu0 %692 }
 0x34c   :  { %v705_v48 = vsub.f32 %v586_v6, %v693_v40 }
 0x34d   :  { %v690_v42 = vpop.xlane.xlu1 %689 }
 0x34e   :  { %v704_v44 = vsub.f32 %v581_v8, %v690_v42  ;;  %v718_v59 = vmul.f32 1.442695, %v705_v48 }
 0x34f   :  { %v699_v43 = vpop.xlane.xlu0 %698 }
 0x350   :  { %v707_v45 = vsub.f32 %v673_v12, %v699_v43  ;;  %v716_v55 = vmul.f32 1.442695, %v704_v44 }
 0x351   :  { %v696_v47 = vpop.xlane.xlu1 %695 }
 0x352   :  { %v722_v49 = vmul.f32 1.442695, %v707_v45  ;;  %v706_v52 = vsub.f32 %v668_v15, %v696_v47 }
 0x353   :  { %v2506_v54 = vpop.eup %2098  ;;  %v308_v60 = vpop.permute.xlu0 %307 }
 0x354   :  { %2100 = vpow2.f32 %v722_v49  ;;  %v720_v56 = vmul.f32 1.442695, %v706_v52  ;;  %v733_v57 = vsel %vm331_vm1, %v2506_v54, 0.0 }
 0x355   :  { %2102 = vpow2.f32 %v712_v46  ;;  %v310_v58 = vpop.permute.xlu1 %309  ;;  %734 = vadd.xlane.f32.xlu0 %v733_v57 }
 0x356   :  { %2104 = vpow2.f32 %v720_v56  ;;  %1978 = vmatprep.subr.mxu1 %v310_v58 }
 0x357   :  { %1979 = vmatpush3.msra.mxu1 %v310_v58  ;;  %2106 = vpow2.f32 %v716_v55 }
 0x358   :  { %1980 = vmatprep.subr.mxu1 %v308_v60  ;;  %2108 = vpow2.f32 %v718_v59 }
 0x359   :  { %v316_v61 = vpop.permute.xlu1 %315  ;;  %1981 = vmatpush3.msra.mxu1 %v308_v60 }
 0x35a   :  { %1985 = vmatprep.subr.mxu0 %v316_v61 }
 0x35d   :  { %v314_v9 = vpop.permute.xlu1 %313 }
 0x361   :  { %v2510_v62 = vpop.eup %2100 }
 0x362   :  { %v2512_v63 = vpop.eup %2102  ;;  %v745_v0 = vsel %vm331_vm1, %v2510_v62, 0.0 }
 0x363   :  { %v2516_v1 = vpop.eup %2104  ;;  %746 = vadd.xlane.f32.xlu0 %v745_v0  ;;  %v730_v5 = vsel %vm331_vm1, %v2512_v63, 0.0 }
 0x364   :  { %v742_v2 = vsel %vm331_vm1, %v2516_v1, 0.0  ;;  %v2520_v4 = vpop.eup %2106 }
 0x365   :  { %743 = vadd.xlane.f32.xlu1 %v742_v2  ;;  %v2524_v6 = vpop.eup %2108  ;;  %v736_v7 = vsel %vm331_vm1, %v2520_v4, 0.0 }
 0x366   :  { %v739_v8 = vsel %vm331_vm1, %v2524_v6, 0.0 }
 0x367   :  { %731 = vadd.xlane.f32.xlu0 %v730_v5 }
 0x369   :  { %737 = vadd.xlane.f32.xlu1 %v736_v7 }
 0x36b   :  { %740 = vadd.xlane.f32.xlu0 %v739_v8 }
 0x37a   :  { %319 = vrot.lane.b32.xlu1 %v2476_v53, %s2268_s16 }
 0x37e   :  { %1094 = vrot.lane.b32.xlu1 %v2415_v25, %s2269_s21 }
 0x381   :  { %321 = vrot.lane.b32.xlu0 %v2473_v51, %s2268_s16 }
 0x382   :  { %1183 = vrot.lane.b32.xlu1 %v2429_v27, %s2269_s21 }
 0x385   :  { %1096 = vrot.lane.b32.xlu0 %v2408_v24, %s2269_s21 }
 0x386   :  { %1274 = vrot.lane.b32.xlu1 %v2399_v23, %s2269_s21 }
 0x389   :  { %1185 = vrot.lane.b32.xlu0 %v2422_v26, %s2269_s21 }
 0x38a   :  { %1367 = vrot.lane.b32.xlu1 %v2383_v21, %s2269_s21 }
 0x38d   :  { %1276 = vrot.lane.b32.xlu0 %v2391_v22, %s2269_s21 }
 0x38e   :  { %v729_v25 = vpop.xlane.xlu1 %728 }
 0x38f   :  { %2110 = vrcp.f32 %v729_v25 }
 0x391   :  { %1369 = vrot.lane.b32.xlu0 %v2378_v20, %s2269_s21 }
 0x392   :  { %v726_v27 = vpop.xlane.xlu1 %725 }
 0x393   :  { %2112 = vrcp.f32 %v726_v27 }
 0x395   :  { %1462 = vrot.lane.b32.xlu0 %v2470_v50, %s2269_s21 }
 0x39c   :  { %v2111_v23 = vpop.eup %2110 }
 0x39d   :  { %v757_v51 = vmul.f32 %v2111_v23, %v2498_v32 }
 0x39f   :  { %v1712_v11 = vsel %vm331_vm1, %v757_v51, 0.0 }
 0x3a0   :  { %v2113_v24 = vpop.eup %2112 }
 0x3a1   :  { %v756_v26 = vmul.f32 %v2113_v24, %v2502_v34 }
 0x3a3   :  { %1975 = vmatprep.mubr.msk.f32.mxu0 %vm331_vm1, %v756_v26  ;;  %v1705_v34 = vsel %vm331_vm1, %v756_v26, 0.0 }
 0x3a4   :  { %1976 = vmatmul.mubr.msk.f32.vlgmr.msra.gmra.mxu0 %vm331_vm1, %v757_v51 }
 0x3a5   :  { %1986 = vmatpush3.msra.mxu0 %v316_v61 }
 0x3a6   :  { %1987 = vmatprep.subr.mxu0 %v314_v9 }
 0x3a7   :  { %1988 = vmatpush3.msra.mxu0 %v314_v9 }
 0x3de   :  { %v735_v20 = vpop.xlane.xlu0 %734 }
 0x3df   :  { %2114 = vrcp.f32 %v735_v20 }
 0x3ec   :  { %v2115_v21 = vpop.eup %2114  ;;  %v747_v22 = vpop.xlane.xlu0 %746 }
 0x3ed   :  { %v759_v53 = vmul.f32 %v2115_v21, %v2506_v54 }
 0x3ee   :  { %v744_v50 = vpop.xlane.xlu1 %743 }
 0x3ef   :  { %v1713_v12 = vsel %vm331_vm1, %v759_v53, 0.0  ;;  %2116 = vrcp.f32 %v744_v50 }
 0x3f0   :  { %v732_v13 = vpop.xlane.xlu0 %731  ;;  %v1714_v14 = vadd.f32 %v1713_v12, %v1712_v11 }
 0x3f1   :  { %2118 = vrcp.f32 %v732_v13 }
 0x3f2   :  { %2120 = vrcp.f32 %v747_v22  ;;  %v738_v15 = vpop.xlane.xlu1 %737 }
 0x3f3   :  { %2122 = vrcp.f32 %v738_v15 }
 0x3f4   :  { %v741_v16 = vpop.xlane.xlu0 %740 }
 0x3f5   :  { %2124 = vrcp.f32 %v741_v16 }
 0x3f6   :  { %v320_v18 = vpop.permute.xlu1 %319 }
 0x3f8   :  { %v322_v17 = vpop.permute.xlu0 %321 }
 0x3f9   :  { %1992 = vmatprep.subr.mxu1 %v322_v17 }
 0x3fa   :  { %v1095_v32 = vpop.permute.xlu1 %1094 }
 0x3fc   :  { %v1097_v19 = vpop.permute.xlu0 %1096  ;;  %v2117_v28 = vpop.eup %2116 }
 0x3fd   :  { %1999 = vmatprep.subr.mxu0 %v1097_v19  ;;  %v762_v37 = vmul.f32 %v2117_v28, %v2516_v1 }
 0x3fe   :  { %v2119_v29 = vpop.eup %2118  ;;  %v1184_v45 = vpop.permute.xlu1 %1183 }
 0x3ff   :  { %v2121_v30 = vpop.eup %2120  ;;  %v758_v31 = vmul.f32 %v2119_v29, %v2512_v63  ;;  %v1710_v47 = vsel %vm331_vm1, %v762_v37, 0.0 }
 0x400   :  { %v2123_v33 = vpop.eup %2122  ;;  %v763_v42 = vmul.f32 %v2121_v30, %v2510_v62  ;;  %v1186_v43 = vpop.permute.xlu0 %1185 }
 0x401   :  { %1982 = vmatprep.mubr.msk.f32.mxu1 %vm331_vm1, %v758_v31  ;;  %v1706_v35 = vsel %vm331_vm1, %v758_v31, 0.0  ;;  %v760_v36 = vmul.f32 %v2123_v33, %v2520_v4  ;;  %v1516_v33 = vld [vmem:[%s2702_s3 + $0xb8] sm:$0xff] }
 0x402   :  { %v2125_v38 = vpop.eup %2124  ;;  %v1707_v39 = vadd.f32 %v1706_v35, %v1705_v34  ;;  %1983 = vmatmul.mubr.msk.f32.vlgmr.msra.gmra.mxu1 %vm331_vm1, %v759_v53  ;;  %v1717_v52 = vsel %vm331_vm1, %v763_v42, 0.0  ;;  %v1275_v58 = vpop.permute.xlu1 %1274  ;;  %v1515_v34 = vld [vmem:[%s2702_s3 + $0xa0] sm:$0xff]  ;;  %v1514_v35 = vld [vmem:[%s2702_s3 + $0x88] sm:$0xff] }
 0x403   :  { %1993 = vmatpush3.msra.mxu1 %v322_v17  ;;  %1989 = vmatprep.mubr.msk.f32.mxu0 %vm331_vm1, %v760_v36  ;;  %v1708_v40 = vsel %vm331_vm1, %v760_v36, 0.0  ;;  %v761_v41 = vmul.f32 %v2125_v38, %v2524_v6  ;;  %v1513_v36 = vld [vmem:[%s2702_s3 + $0x70] sm:$0xff]  ;;  %v1512_v38 = vld [vmem:[%s2702_s3 + $0x58] sm:$0xff] }
 0x404   :  { %1994 = vmatprep.subr.mxu1 %v320_v18  ;;  %1996 = vmatprep.mubr.msk.f32.mxu1 %vm331_vm1, %v762_v37  ;;  %v1709_v44 = vadd.f32 %v1708_v40, %v1707_v39  ;;  %v1277_v56 = vpop.permute.xlu0 %1276  ;;  %v2614_v37 = vld [vmem:[#allocation8 + $0x2] ss:$0 sm:$0xff]  ;;  %v1511_v39 = vld [vmem:[%s2702_s3 + $0x40] sm:$0xff]  ;;  %v1510_v40 = vld [vmem:[%s2702_s3 + $0x28] sm:$0xff] }
 0x405   :  { %1995 = vmatpush3.msra.mxu1 %v320_v18  ;;  %1990 = vmatmul.mubr.msk.f32.vlgmr.msra.gmra.mxu0 %vm331_vm1, %v761_v41  ;;  %v1715_v46 = vsel %vm331_vm1, %v761_v41, 0.0  ;;  %v1509_v41 = vld [vmem:[%s2702_s3 + $0x10] sm:$0xff]  ;;  %s2271_s3 = smov [#allocation11]  }
 0x406   :  { %1997 = vmatmul.mubr.msk.f32.vlgmr.msra.gmra.mxu1 %vm331_vm1, %v763_v42  ;;  %2006 = vmatprep.subr.mxu1 %v1186_v43  ;;  %v1716_v48 = vadd.f32 %v1715_v46, %v1714_v14  ;;  %v1711_v49 = vadd.f32 %v1710_v47, %v1709_v44  ;;  %v1368_v61 = vpop.permute.xlu1 %1367  ;;  %v1620_v42 = vld [vmem:[%s2703_s4 + $0x78] sm:$0xff]  ;;  %v1618_v44 = vld [vmem:[%s2703_s4 + $0x68] sm:$0xff]  ;;  %v1615_v47 = vld [vmem:[%s2703_s4 + $0x50] sm:$0xff]  ;;  %s1747_s28 = sshll.u32 %s2271_s3, 4  ;;  %s1748_s28 = int_to_ptr.vmem [resolvable:$true] %s1747_s28 }
 0x407   :  { %2007 = vmatpush3.msra.mxu1 %v1186_v43  ;;  %2000 = vmatpush3.msra.mxu0 %v1097_v19  ;;  %v1619_v43 = vld [vmem:[%s2703_s4 + $0x70] sm:$0xff]  ;;  %v1616_v46 = vld [vmem:[%s2703_s4 + $0x58] sm:$0xff]  ;;  %s2210_s8 = scalar_lea.vmem %s1748_s28, 256  ;;  %p2215_p7 = scmp.lt.s32.totalorder %s1748_s28, %s1748_s28 }
 0x408   :  { %2008 = vmatprep.subr.mxu1 %v1184_v45  ;;  %2001 = vmatprep.subr.mxu0 %v1095_v32  ;;  %v2576_v54 = vadd.f32 %v1717_v52, %v1716_v48  ;;  %v1720_v55 = vmul.f32 0.25, %v1711_v49  ;;  %v1370_v57 = vpop.permute.xlu0 %1369  ;;  %v1614_v48 = vld [vmem:[%s2703_s4 + $0x48] sm:$0xff]  ;;  %v1613_v49 = vld [vmem:[%s2703_s4 + $0x40] sm:$0xff]  ;;  %v1612_v52 = vld [vmem:[%s2703_s4 + $0x38] sm:$0xff]  ;;  %p2211_p6 = scmp.ne.s32.totalorder %s1748_s28, %s2210_s8  ;;  %p2216_p8 = scmp.lt.s32.totalorder %s2210_s8, %s2210_s8 }
 0x409   :  { %2009 = vmatpush3.msra.mxu1 %v1184_v45  ;;  %2002 = vmatpush3.msra.mxu0 %v1095_v32  ;;  %v1617_v45 = vld [vmem:[%s2703_s4 + $0x60] sm:$0xff] }
 0x40a   :  { %2013 = vmatprep.subr.mxu0 %v1277_v56  ;;  %1723 = vst.msk [vmem:[#allocation11] sm:$0xff] %vm1722_vm2, %v1720_v55  ;;  %2020 = vmatprep.subr.mxu1 %v1370_v57  ;;  %v1721_v32 = vmul.f32 0.25, %v2576_v54  ;;  %v1611_v54 = vld [vmem:[%s2703_s4 + $0x30] sm:$0xff]  ;;  %v1610_v55 = vld [vmem:[%s2703_s4 + $0x28] sm:$0xff]  ;;  %p2217_p9 = por %p2216_p8, %p2215_p7 }
 0x40c   :  { %v1463_v51 = vpop.permute.xlu0 %1462  ;;  %p2218_p10 = pnand %p2217_p9, %p2211_p6 }
 0x464   :  { %v1977_v59 = vpop.f32.mrf.mxu0 }
 0x466   :  { %v836_v60 = vpop.f32.mrf.mxu0 }
 0x467   :  { %2010 = vmatprep.mubr.msk.f32.mxu1 %vm331_vm1, %v836_v60 }
 0x468   :  { %2011 = vmatmul.mubr.msk.f32.vlgmr.msra.gmra.mxu1 %vm331_vm1, %v1977_v59 }
 0x469   :  { %2021 = vmatpush3.msra.mxu1 %v1370_v57 }
 0x46a   :  { %2022 = vmatprep.subr.mxu1 %v1368_v61 }
 0x46b   :  { %2023 = vmatpush3.msra.mxu1 %v1368_v61 }
 0x46c   :  { %2046 = vmatprep.subr.mxu1 %v1620_v42 }
 0x4c2   :  { %v1984_v62 = vpop.f32.mrf.mxu1 }
 0x4c4   :  { %v917_v63 = vpop.f32.mrf.mxu1 }
 0x4c5   :  { %v1991_v0 = vpop.f32.mrf.mxu0  ;;  %2003 = vmatprep.mubr.msk.f32.mxu0 %vm331_vm1, %v917_v63 }
 0x4c6   :  { %v1998_v1 = vpop.f32.mrf.mxu1  ;;  %2004 = vmatmul.mubr.msk.f32.vlgmr.msra.gmra.mxu0 %vm331_vm1, %v1984_v62 }
 0x4c7   :  { %2014 = vmatpush3.msra.mxu0 %v1277_v56  ;;  %v998_v2 = vpop.f32.mrf.mxu0  ;;  %v1609_v56 = vld [vmem:[%s2703_s4 + $0x20] sm:$0xff] }
 0x4c8   :  { %2015 = vmatprep.subr.mxu0 %v1275_v58  ;;  %v1079_v4 = vpop.f32.mrf.mxu1  ;;  %2017 = vmatprep.mubr.msk.f32.mxu0 %vm331_vm1, %v998_v2 }
 0x4c9   :  { %2016 = vmatpush3.msra.mxu0 %v1275_v58  ;;  %2024 = vmatprep.mubr.msk.f32.mxu1 %vm331_vm1, %v1079_v4 }
 0x4ca   :  { %2018 = vmatmul.mubr.msk.f32.vlgmr.msra.gmra.mxu0 %vm331_vm1, %v1991_v0  ;;  %2025 = vmatmul.mubr.msk.f32.vlgmr.msra.gmra.mxu1 %vm331_vm1, %v1998_v1 }
 0x4cb   :  { %2027 = vmatprep.subr.mxu0 %v1516_v33  ;;  %2047 = vmatpush3.msra.mxu1 %v1620_v42 }
 0x4cc   :  { %2028 = vmatpush3.msra.mxu0 %v1516_v33  ;;  %2048 = vmatprep.subr.mxu1 %v1619_v43 }
 0x4cd   :  { %2029 = vmatprep.subr.mxu0 %v1515_v34  ;;  %2049 = vmatpush3.msra.mxu1 %v1619_v43 }
 0x4ce   :  { %2030 = vmatpush3.msra.mxu0 %v1515_v34  ;;  %2050 = vmatprep.subr.mxu1 %v1618_v44 }
 0x4cf   :  { %2031 = vmatprep.subr.mxu0 %v1514_v35  ;;  %2051 = vmatpush3.msra.mxu1 %v1618_v44 }
 0x4d0   :  { %2032 = vmatpush3.msra.mxu0 %v1514_v35  ;;  %2052 = vmatprep.subr.mxu1 %v1617_v45 }
 0x4d1   :  { %2033 = vmatprep.subr.mxu0 %v1513_v36  ;;  %2053 = vmatpush3.msra.mxu1 %v1617_v45 }
 0x4d2   :  { %2034 = vmatpush3.msra.mxu0 %v1513_v36  ;;  %2054 = vmatprep.subr.mxu1 %v1616_v46 }
 0x4d3   :  { %2035 = vmatprep.subr.mxu0 %v1512_v38  ;;  %2055 = vmatpush3.msra.mxu1 %v1616_v46 }
 0x4d4   :  { %2036 = vmatpush3.msra.mxu0 %v1512_v38  ;;  %2056 = vmatprep.subr.mxu1 %v1615_v47 }
 0x4d5   :  { %2037 = vmatprep.subr.mxu0 %v1511_v39  ;;  %2057 = vmatpush3.msra.mxu1 %v1615_v47 }
 0x4d6   :  { %2038 = vmatpush3.msra.mxu0 %v1511_v39  ;;  %2058 = vmatprep.subr.mxu1 %v1614_v48 }
 0x4d7   :  { %2039 = vmatprep.subr.mxu0 %v1510_v40  ;;  %2059 = vmatpush3.msra.mxu1 %v1614_v48 }
 0x4d8   :  { %2040 = vmatpush3.msra.mxu0 %v1510_v40  ;;  %2060 = vmatprep.subr.mxu1 %v1613_v49 }
 0x4d9   :  { %2041 = vmatprep.subr.mxu0 %v1509_v41  ;;  %2061 = vmatpush3.msra.mxu1 %v1613_v49 }
 0x4da   :  { %2042 = vmatpush3.msra.mxu0 %v1509_v41  ;;  %2062 = vmatprep.subr.mxu1 %v1612_v52 }
 0x4db   :  { %2063 = vmatpush3.msra.mxu1 %v1612_v52 }
 0x4dc   :  { %2064 = vmatprep.subr.mxu1 %v1611_v54 }
 0x4dd   :  { %2065 = vmatpush3.msra.mxu1 %v1611_v54 }
 0x4de   :  { %2066 = vmatprep.subr.mxu1 %v1610_v55 }
 0x4df   :  { %2067 = vmatpush3.msra.mxu1 %v1610_v55 }
 0x4e0   :  { %2068 = vmatprep.subr.mxu1 %v1609_v56 }
 0x4e1   :  { %2069 = vmatpush3.msra.mxu1 %v1609_v56 }
 0x528   :  { %v2012_v5 = vpop.f32.mrf.mxu1 }
 0x52a   :  { %v1261_v7 = vpop.f32.mrf.mxu1 }
 0x586   :  { %v2005_v6 = vpop.f32.mrf.mxu0 }
 0x587   :  { %v1267_v9 = vadd.f32 %v2012_v5, %v2005_v6 }
 0x588   :  { %v1172_v8 = vpop.f32.mrf.mxu0 }
 0x589   :  { %v1262_v23 = vadd.f32 %v1261_v7, %v1172_v8 }
 0x58a   :  { %v2019_v25 = vpop.f32.mrf.mxu0  ;;  %v2026_v27 = vpop.f32.mrf.mxu1 }
 0x58b   :  { %v1362_v24 = vadd.f32 %v2019_v25, %v1267_v9  ;;  %v1608_v25 = vld [vmem:[%s2703_s4 + $0x18] sm:$0xff] }
 0x58c   :  { %v1352_v26 = vpop.f32.mrf.mxu0  ;;  %v1445_v22 = vpop.f32.mrf.mxu1  ;;  %2070 = vmatprep.subr.mxu1 %v1608_v25 }
 0x58d   :  { %v1455_v20 = vadd.f32 %v2026_v27, %v1362_v24  ;;  %v1361_v21 = vadd.f32 %v1352_v26, %v1262_v23  ;;  %2071 = vmatpush3.msra.mxu1 %v1608_v25  ;;  %v1607_v27 = vld [vmem:[%s2703_s4 + $0x10] sm:$0xff]  ;;  %v1606_v23 = vld [vmem:[%s2703_s4 + $0x8] sm:$0xff]  ;;  %v1605_v24 = vld [vmem:[%s2703_s4] sm:$0xff] }
 0x58e   :  { %2072 = vmatprep.subr.mxu1 %v1607_v27  ;;  %v1805_v26 = vld [vmem:[#allocation8 + $0x3] ss:$0 sm:$0xff] }
 0x58f   :  { %v1454_v53 = vadd.f32 %v1445_v22, %v1361_v21  ;;  %v1466_v50 = vadd.f32 %v1463_v51, %v1455_v20  ;;  %2073 = vmatpush3.msra.mxu1 %v1607_v27 }
 0x590   :  { %2074 = vmatprep.subr.mxu1 %v1606_v23 }
 0x591   :  { %v1465_v11 = vadd.f32 %v1463_v51, %v1454_v53  ;;  %v1468_v12 = vadd.f32 %v1466_v50, %v2361_v10  ;;  %2075 = vmatpush3.msra.mxu1 %v1606_v23 }
 0x592   :  { %2076 = vmatprep.subr.mxu1 %v1605_v24 }
 0x593   :  { %v1472_v13 = vsel %vm99_vm0, %v1468_v12, 0.0  ;;  %v1467_v14 = vadd.f32 %v1465_v11, %v2343_v3  ;;  %2077 = vmatpush3.msra.mxu1 %v1605_v24 }
 0x594   :  { %1473 = vadd.xlane.f32.xlu0 %v1472_v13 }
 0x595   :  { %v1469_v15 = vsel %vm99_vm0, %v1467_v14, 0.0 }
 0x596   :  { %1470 = vadd.xlane.f32.xlu1 %v1469_v15 }
 0x61d   :  { %v1474_v16 = vpop.xlane.xlu0 %1473 }
 0x61e   :  { %v1477_v17 = vmul.f32 0.015625, %v1474_v16 }
 0x61f   :  { %v1471_v18 = vpop.xlane.xlu1 %1470 }
 0x620   :  { %v2591_v19 = vsub.f32 %v1468_v12, %v1477_v17  ;;  %v1476_v28 = vmul.f32 0.015625, %v1471_v18 }
 0x622   :  { %v2593_v29 = vsub.f32 %v1467_v14, %v1476_v28  ;;  %v1481_v30 = vmul.f32 %v2591_v19, %v2591_v19 }
 0x624   :  { %v1485_v10 = vsel %vm99_vm0, %v1481_v30, 0.0  ;;  %v1480_v3 = vmul.f32 %v2593_v29, %v2593_v29 }
 0x625   :  { %1486 = vadd.xlane.f32.xlu1 %v1485_v10 }
 0x626   :  { %v1482_v31 = vsel %vm99_vm0, %v1480_v3, 0.0 }
 0x627   :  { %1483 = vadd.xlane.f32.xlu0 %v1482_v31 }
 0x636   :  { %1725 = vrot.lane.b32.xlu1 %v1721_v32, %s2270_s13 }
 0x63d   :  { %1504 = vrot.lane.b32.xlu0 %v2614_v37, %s2269_s21 }
 0x6ae   :  { %v1487_v57 = vpop.xlane.xlu1 %1486 }
 0x6af   :  { %v1489_v58 = vmul.f32 0.015625, %v1487_v57 }
 0x6b0   :  { %v1484_v59 = vpop.xlane.xlu0 %1483 }
 0x6b1   :  { %v1491_v60 = vadd.f32 1e-05, %v1489_v58  ;;  %v1488_v61 = vmul.f32 0.015625, %v1484_v59 }
 0x6b2   :  { %v1726_v62 = vpop.permute.xlu1 %1725 }
 0x6b3   :  { %2126 = vrsqrt.f32 %v1491_v60  ;;  %v1490_v63 = vadd.f32 1e-05, %v1488_v61  ;;  %1729 = vst.msk [vmem:[#allocation11 + $0x8] sm:$0xff] %vm1722_vm2, %v1726_v62 }
 0x6b4   :  { %v1505_v7 = vpop.permute.xlu0 %1504 }
 0x6b5   :  { %2128 = vrsqrt.f32 %v1490_v63 }
 0x6c0   :  { %v2127_v0 = vpop.eup %2126 }
 0x6c1   :  { %v1495_v1 = vmul.f32 %v2127_v0, %v2591_v19 }
 0x6c2   :  { %v2129_v2 = vpop.eup %2128 }
 0x6c3   :  { %v1494_v4 = vmul.f32 %v2129_v2, %v2593_v29  ;;  %v1502_v5 = vmul.f32 %v2614_v37, %v1495_v1 }
 0x6c5   :  { %v1501_v6 = vmul.f32 %v2614_v37, %v1494_v4  ;;  %v1508_v9 = vadd.f32 %v1505_v7, %v1502_v5 }
 0x6c7   :  { %v1507_v8 = vadd.f32 %v1505_v7, %v1501_v6 }
 0x6c9   :  { %2043 = vmatprep.mubr.msk.f32.mxu0 %vm99_vm0, %v1507_v8 }
 0x6ca   :  { %2044 = vmatmul.mubr.msk.f32.vlgmr.msra.gmra.mxu0 %vm99_vm0, %v1508_v9 }
 0x78a   :  { %v2045_v51 = vpop.f32.mrf.mxu0 }
 0x78b   :  { %v1600_v20 = vadd.f32 %v2045_v51, %v1805_v26 }
 0x78c   :  { %v1594_v21 = vpop.f32.mrf.mxu0 }
 0x78d   :  { %v1595_v22 = vadd.f32 %v1805_v26, %v1594_v21  ;;  %v1604_v50 = vmax.f32 %v1600_v20, 0.0 }
 0x78f   :  { %v1603_v53 = vmax.f32 %v1595_v22, 0.0 }
 0x791   :  { %2078 = vmatprep.mubr.f32.mxu1 %v1603_v53 }
 0x792   :  { %2079 = vmatmul.mubr.f32.vlgmr.msra.gmra.mxu1 %v1604_v50 }
 0x793   :  { %2221 = shalt.err (!%p2218_p10)
}
 0x794   :  { %1753 = dma.vmem_to_hbm [thread:$0]  %s1748_s28, 256, %s2706_s7, [#allocation12], %s2262_s29, %s2262_s29, %s2263_s30   ;;  %v1808_v11 = vld [vmem:[#allocation8 + $0x4] ss:$0 sm:$0xff] }
 0x795   :  { %s2272_s10 = smov [#allocation10]  }
 0x796   :  { %s1735_s11 = sshll.u32 %s2272_s10, 4  ;;  %s1736_s11 = int_to_ptr.vmem [resolvable:$true] %s1735_s11 }
 0x797   :  { %s2230_s12 = scalar_lea.vmem %s1736_s11, 256  ;;  %p2235_p12 = scmp.lt.s32.totalorder %s1736_s11, %s1736_s11 }
 0x798   :  { %p2231_p11 = scmp.ne.s32.totalorder %s1736_s11, %s2230_s12  ;;  %p2236_p13 = scmp.lt.s32.totalorder %s2230_s12, %s2230_s12 }
 0x79a   :  { %p2237_p0 = por %p2236_p13, %p2235_p12 }
 0x79c   :  { %p2238_p1 = pnand %p2237_p0, %p2231_p11 }
 0x852   :  { %v2080_v12 = vpop.f32.mrf.mxu1 }
 0x853   :  { %v1698_v13 = vadd.f32 %v2080_v12, %v1808_v11 }
 0x854   :  { %v1692_v14 = vpop.f32.mrf.mxu1 }
 0x855   :  { %v1702_v15 = vadd.f32 %v1698_v13, %v1508_v9  ;;  %v1693_v16 = vadd.f32 %v1808_v11, %v1692_v14 }
 0x857   :  { %1704 = vst.msk [vmem:[#allocation10 + $0x8] sm:$0xff] %vm99_vm0, %v1702_v15  ;;  %v1701_v17 = vadd.f32 %v1693_v16, %v1507_v8 }
 0x859   :  { %1703 = vst.msk [vmem:[#allocation10] sm:$0xff] %vm99_vm0, %v1701_v17 }
 0x85a   :  { %2241 = shalt.err (!%p2238_p1)
}
 0x85b   :  { %1741 = dma.vmem_to_hbm [thread:$0]  %s1736_s11, 256, %s2705_s6, [#allocation4], %s2262_s29, %s2262_s29, %s2263_s30  }
 0x85c   :  { %2256 = dma.done.wait [#allocation4], 256  }
 0x85d   :  { %2257 = vsyncadd [#allocation4], 4294967040 }
 0x85e   :  { %2258 = dma.done.wait [#allocation12], 256  }
 0x85f   :  { %2259 = vsyncadd [#allocation12], 4294967040 }
 0x860   :  { %1760 = vsyncpa [#allocation3], 1 }
 0x861   :  { %1761 = vsyncpa [#allocation6], 1 }
 0x862   :  { %1762 = vsyncpa [#allocation9], 1 }
 0x863   :  { %1763 = vsyncpa [#allocation4], 1 }
 0x864   :  { %1764 = vsyncpa [#allocation12], 1 }

</bundles_post_ra>
